<compile_context>
chip_gen: v6e
topology: v6e:2x2x1
jax: 0.10.0
libtpu: 0.0.40
codegen_flags: <defaults>
</compile_context>

<pallas_src>
import jax
import jax.numpy as jnp
from jax.experimental import pallas as pl
from jax.experimental.pallas import tpu as pltpu  # noqa: F401  (no VMEM/grid needed)


def _alias_noop_kernel(x_hbm_ref, o_hbm_ref):
    # Output aliases input (input_output_aliases={0: 0}); the data is already
    # exactly where it needs to be, so there is deliberately nothing to do.
    # No loads, no stores, no DMA -> zero HBM traffic inside the kernel.
    del x_hbm_ref, o_hbm_ref


def identity_embedding(x: jax.Array) -> jax.Array:
    """Pallas equivalent of IdentityEmbedding.forward: x.unsqueeze(-1)."""
    if x.ndim == 0:
        # torch: scalar.unsqueeze(-1) -> shape (1,).  Pure metadata; no kernel.
        return x.reshape((1,))

    y = pl.pallas_call(
        _alias_noop_kernel,
        out_shape=jax.ShapeDtypeStruct(x.shape, x.dtype),
        # Leave both operands in place (HBM): no tiling, no VMEM pipeline.
        in_specs=[pl.BlockSpec(memory_space=pl.ANY)],
        out_specs=pl.BlockSpec(memory_space=pl.ANY),
        # The whole point: output 0 IS input 0 -> no copy, no HBM traffic.
        input_output_aliases={0: 0},
        # Advisory: pure memory-op with (when aliased) zero bytes moved.
        cost_estimate=pl.CostEstimate(flops=0, transcendentals=0,
                                      bytes_accessed=0),
    )(x)

    # The unsqueeze(-1) itself is a free metadata reshape in the wrapper.
    return y.reshape(x.shape + (1,))


if __name__ == "__main__":
    key = jax.random.PRNGKey(0)
    # 1-D toy: batch=2, seq=8.
    x = jax.random.normal(key, (2, 8), dtype=jnp.float32)

    # Compute the reference BEFORE the aliased call (defensive: if the input
    # buffer is ever donated to the aliased output, x's value would no longer
    # be readable afterwards).
    ref = jnp.expand_dims(x, -1)

    y = identity_embedding(x)
    y = jax.block_until_ready(y)

    assert y.shape == (2, 8, 1), y.shape
    assert y.dtype == ref.dtype
    assert jnp.array_equal(y, ref)

    # Also exercise the realistic (jitted) path — where the alias makes the
    # op free — with a different rank/dtype.
    x3 = jax.random.normal(jax.random.PRNGKey(0), (2, 4, 8), dtype=jnp.bfloat16)
    ref3 = jnp.expand_dims(x3, -1)
    y3 = jax.block_until_ready(jax.jit(identity_embedding)(x3))
    assert y3.shape == (2, 4, 8, 1), y3.shape
    assert y3.dtype == x3.dtype
    assert jnp.array_equal(y3, ref3)

    print("KERNEL_OK")
</pallas_src>

<mosaic_0001>
module attributes {stable_mosaic.version = 11 : i64} {
  func.func @_alias_noop_kernel(%arg0: memref<2x8xf32, #tpu.memory_space<any>>, %arg1: memref<2x8xf32, #tpu.memory_space<any>>) attributes {dimension_semantics = [], scalar_prefetch = 0 : i64, scratch_operands = 0 : i64, tpu.core_type = #tpu.core_type<tc>} {
    return
  }
}

</mosaic_0001>

<bundles_post_ra>
// kernel: tpu_custom_call.1
= control target key start
LH: loop header
LB: loop body
LE: loop exit
PB: predicated region body
PF: predicated region fallthrough
CT: control target
= control target key end

     0   :  { %s16_s0 = inlined_call_operand.hbm [shape: f32[2,8], index: 0, kind: input, shape index: {}, may-alias: {0,1}]   ;;  %s17_s1 = inlined_call_operand.hbm [shape: f32[2,8], index: 1, kind: output, shape index: {}, may-alias: {0,1}]  }

</bundles_post_ra>
